<compile_context>
chip_gen: v5e
topology: v5e:2x2
jax: 0.10.0
libtpu: 0.0.40
codegen_flags: <defaults>
</compile_context>

<pallas_src>
import functools
import math

import jax
import jax.numpy as jnp
from jax.experimental import pallas as pl
from jax.experimental.pallas import tpu as pltpu

BN_EPS = 1e-5
LANE = 128  # pad every feature dim to a full lane width


def _make_fused_kernel(activations, batch_size, state_size):
    """One kernel for the whole network: (BN -> Linear -> act) x len(activations)."""
    inv_b = 1.0 / float(batch_size)

    def kernel(x_ref, w_ref, aux_ref, o_ref):
        # x:   (B, state_size)    raw input activations (widened in-kernel)
        # w:   (L, LANE, LANE)    bf16 per-layer weights, pre-transposed + zero-padded
        # aux: (L, 3, LANE)       f32 per-layer [gamma, beta, bias], zero-padded
        x = x_ref[...].astype(jnp.float32)
        if state_size < LANE:
            # Widen to 128 lanes once; padded lanes stay 0 throughout because
            # gamma=0 and bias=0 on padded lanes of every layer.
            x = jnp.concatenate(
                [x, jnp.zeros((batch_size, LANE - state_size), jnp.float32)],
                axis=1,
            )

        for li, act in enumerate(activations):
            aux = aux_ref[li]                     # (3, LANE)
            gamma = aux[0:1, :]                   # (1, LANE)
            beta = aux[1:2, :]
            bias = aux[2:3, :]

            # BatchNorm1d, training-mode batch stats (biased variance),
            # two-pass variance for numerical fidelity to PyTorch.
            mean = jnp.sum(x, axis=0, keepdims=True) * inv_b
            centered = x - mean
            var = jnp.sum(centered * centered, axis=0, keepdims=True) * inv_b
            scale = gamma * jax.lax.rsqrt(var + BN_EPS)
            xn = centered * scale + beta          # padded lanes: gamma=0 -> xn=0

            # Linear: y = xn @ W + b   (W already (F_in_pad, F_out_pad), bf16)
            y = jnp.dot(
                xn.astype(jnp.bfloat16),
                w_ref[li],
                preferred_element_type=jnp.float32,
            ) + bias

            if act == "relu":
                y = jnp.maximum(y, 0.0)
            elif act == "tanh":
                y = jnp.tanh(y)
            elif act == "identity":
                pass
            else:
                raise ValueError(f"unsupported activation: {act}")
            x = y

        o_ref[...] = x.astype(o_ref.dtype)        # (B, 128): lane-dense, unmasked store

    return kernel


@functools.partial(
    jax.jit, static_argnames=("activations", "state_size", "action_size")
)
def _actor_forward(state, w, aux, *, activations, state_size, action_size):
    """jit-cached forward: traced/lowered once per (B, statics) combination."""
    batch = state.shape[0]
    vmem = pl.BlockSpec(memory_space=pltpu.MemorySpace.VMEM)
    out = pl.pallas_call(
        _make_fused_kernel(activations, batch, state_size),
        out_shape=jax.ShapeDtypeStruct((batch, LANE), jnp.float32),
        in_specs=[vmem, vmem, vmem],
        out_specs=vmem,
    )(state, w, aux)
    return out[:, :action_size]


class ActorPallas:
    """JAX/Pallas re-implementation of the DDPG Actor forward pass (fully fused)."""

    def __init__(self, state_size, action_size, hidden, activation_functions, seed):
        self.state_size = state_size
        self.action_size = action_size
        self.hidden = tuple(hidden)
        self.activations = tuple(activation_functions)

        key = jax.random.PRNGKey(seed)
        sizes = [state_size] + list(hidden) + [action_size]
        n_layers = len(sizes) - 1
        assert len(self.activations) == n_layers

        w_stack, aux_stack = [], []
        for li in range(n_layers):
            fan_in, fan_out = sizes[li], sizes[li + 1]
            assert fan_in <= LANE and fan_out <= LANE
            key, kw, kb = jax.random.split(key, 3)
            if li < n_layers - 1:
                # hidden_init uses weight.size()[0] == out_features in PyTorch layout
                lim = 1.0 / math.sqrt(fan_out)
            else:
                lim = 3e-3
            # PyTorch weight is (out, in); sample, transpose to (in, out), pad to (128, 128)
            w = jax.random.uniform(kw, (fan_out, fan_in), jnp.float32, -lim, lim)
            # bias keeps default nn.Linear init: U(-1/sqrt(fan_in), 1/sqrt(fan_in))
            blim = 1.0 / math.sqrt(fan_in)
            b = jax.random.uniform(kb, (fan_out,), jnp.float32, -blim, blim)

            w_t = jnp.zeros((LANE, LANE), jnp.float32).at[:fan_in, :fan_out].set(w.T)
            gamma = jnp.zeros((LANE,), jnp.float32).at[:fan_in].set(1.0)  # pad lanes -> 0
            beta = jnp.zeros((LANE,), jnp.float32)
            b_pad = jnp.zeros((LANE,), jnp.float32).at[:fan_out].set(b)

            w_stack.append(w_t)
            aux_stack.append(jnp.stack([gamma, beta, b_pad], axis=0))

        # Weights in bf16 (halves the dominant HBM->VMEM DMA; MXU-native path).
        self.w = jnp.stack(w_stack, axis=0).astype(jnp.bfloat16)   # (L, 128, 128)
        self.aux = jnp.stack(aux_stack, axis=0)                    # (L, 3, 128) f32
        self.n_layers = n_layers

    def __call__(self, state):
        state = jnp.asarray(state, jnp.float32)
        # mirror: if len(state) == state_size: state = state.unsqueeze(0)
        if state.ndim == 1 and state.shape[0] == self.state_size:
            state = state[None, :]
        return _actor_forward(
            state,
            self.w,
            self.aux,
            activations=self.activations,
            state_size=self.state_size,
            action_size=self.action_size,
        )

    # Pure-JAX reference (same math, unfused) used only for the self-check below.
    def reference(self, state):
        state = jnp.asarray(state, jnp.float32)
        if state.ndim == 1 and state.shape[0] == self.state_size:
            state = state[None, :]
        x = state
        sizes = [self.state_size] + list(self.hidden) + [self.action_size]
        for li, act in enumerate(self.activations):
            fan_in, fan_out = sizes[li], sizes[li + 1]
            mean = jnp.mean(x, axis=0, keepdims=True)
            centered = x - mean
            var = jnp.mean(centered * centered, axis=0, keepdims=True)
            xn = centered * jax.lax.rsqrt(var + BN_EPS)
            w_t = self.w[li, :fan_in, :fan_out]                 # bf16
            b = self.aux[li, 2, :fan_out][None, :]
            y = jnp.dot(
                xn.astype(jnp.bfloat16), w_t, preferred_element_type=jnp.float32
            ) + b
            if act == "relu":
                y = jnp.maximum(y, 0.0)
            elif act == "tanh":
                y = jnp.tanh(y)
            x = y
        return x


if __name__ == "__main__":
    # small shapes consistent with the module
    batch = 8
    state_size = 32
    hidden = (64, 64)
    action_size = 8
    activations = ("relu", "relu", "tanh")

    actor = ActorPallas(state_size, action_size, hidden, activations, seed=0)

    key = jax.random.PRNGKey(0)
    state = jax.random.normal(key, (batch, state_size), jnp.float32)

    out = actor(state)
    out = jax.block_until_ready(out)
    # Second call exercises the jit dispatch cache (no re-trace / re-lowering).
    out2 = jax.block_until_ready(actor(state))
    assert out.shape == (batch, action_size), out.shape
    assert bool(jnp.all(jnp.isfinite(out)))
    assert bool(jnp.allclose(out, out2))

    ref = jax.block_until_ready(actor.reference(state))
    assert bool(jnp.allclose(out, ref, rtol=1e-3, atol=2e-3)), (
        float(jnp.max(jnp.abs(out - ref)))
    )
    print("KERNEL_OK")
</pallas_src>

<mosaic_0001>
module attributes {stable_mosaic.version = 11 : i64} {
  func.func @kernel(%arg0: memref<8x32xf32, #tpu.memory_space<vmem>>, %arg1: memref<3x128x128xbf16, #tpu.memory_space<vmem>>, %arg2: memref<3x3x128xf32, #tpu.memory_space<vmem>>, %arg3: memref<8x128xf32, #tpu.memory_space<vmem>>) attributes {dimension_semantics = [], scalar_prefetch = 0 : i64, scratch_operands = 0 : i64, tpu.core_type = #tpu.core_type<tc>} {
    %c0 = arith.constant 0 : index
    %c0_0 = arith.constant 0 : index
    %0 = vector.load %arg0[%c0, %c0_0] : memref<8x32xf32, #tpu.memory_space<vmem>>, vector<8x32xf32>
    %cst = arith.constant 0.000000e+00 : f32
    %1 = vector.broadcast %cst : f32 to vector<8x96xf32>
    %2 = tpu.concatenate %0, %1 in 1 : vector<8x32xf32>, vector<8x96xf32> -> vector<8x128xf32>
    %c0_1 = arith.constant 0 : index
    %c0_2 = arith.constant 0 : index
    %c0_3 = arith.constant 0 : index
    %3 = vector.load %arg2[%c0_1, %c0_2, %c0_3] : memref<3x3x128xf32, #tpu.memory_space<vmem>>, vector<1x3x128xf32>
    %4 = vector.shape_cast %3 : vector<1x3x128xf32> to vector<3x128xf32>
    %5 = vector.extract_strided_slice %4 {offsets = [0, 0], sizes = [1, 128], strides = [1, 1]} : vector<3x128xf32> to vector<1x128xf32>
    %6 = vector.extract_strided_slice %4 {offsets = [1, 0], sizes = [1, 128], strides = [1, 1]} : vector<3x128xf32> to vector<1x128xf32>
    %7 = vector.extract_strided_slice %4 {offsets = [2, 0], sizes = [1, 128], strides = [1, 1]} : vector<3x128xf32> to vector<1x128xf32>
    %cst_4 = arith.constant dense<0.000000e+00> : vector<128xf32>
    %8 = vector.multi_reduction <add>, %2, %cst_4 [0] : vector<8x128xf32> to vector<128xf32>
    %9 = vector.shape_cast %8 : vector<128xf32> to vector<1x128xf32>
    %cst_5 = arith.constant 1.250000e-01 : f32
    %10 = vector.broadcast %cst_5 : f32 to vector<1x128xf32>
    %11 = arith.mulf %9, %10 : vector<1x128xf32>
    %12 = vector.broadcast %11 : vector<1x128xf32> to vector<8x128xf32>
    %13 = arith.subf %2, %12 : vector<8x128xf32>
    %14 = arith.mulf %13, %13 : vector<8x128xf32>
    %cst_6 = arith.constant dense<0.000000e+00> : vector<128xf32>
    %15 = vector.multi_reduction <add>, %14, %cst_6 [0] : vector<8x128xf32> to vector<128xf32>
    %16 = vector.shape_cast %15 : vector<128xf32> to vector<1x128xf32>
    %cst_7 = arith.constant 1.250000e-01 : f32
    %17 = vector.broadcast %cst_7 : f32 to vector<1x128xf32>
    %18 = arith.mulf %16, %17 : vector<1x128xf32>
    %cst_8 = arith.constant 9.99999974E-6 : f32
    %19 = vector.broadcast %cst_8 : f32 to vector<1x128xf32>
    %20 = arith.addf %18, %19 : vector<1x128xf32>
    %21 = math.rsqrt %20 : vector<1x128xf32>
    %22 = arith.mulf %5, %21 : vector<1x128xf32>
    %23 = vector.broadcast %22 : vector<1x128xf32> to vector<8x128xf32>
    %24 = arith.mulf %13, %23 : vector<8x128xf32>
    %25 = vector.broadcast %6 : vector<1x128xf32> to vector<8x128xf32>
    %26 = arith.addf %24, %25 : vector<8x128xf32>
    %27 = arith.truncf %26 : vector<8x128xf32> to vector<8x128xbf16>
    %c0_9 = arith.constant 0 : index
    %c0_10 = arith.constant 0 : index
    %c0_11 = arith.constant 0 : index
    %28 = vector.load %arg1[%c0_9, %c0_10, %c0_11] : memref<3x128x128xbf16, #tpu.memory_space<vmem>>, vector<1x128x128xbf16>
    %29 = vector.shape_cast %28 : vector<1x128x128xbf16> to vector<128x128xbf16>
    %cst_12 = arith.constant dense<0.000000e+00> : vector<8x128xf32>
    %30 = tpu.matmul %27, %29, %cst_12 {dimension_numbers = #tpu.dot_dimension_numbers<[1], [0], [0], [1], [0, 0, 1, 1], [], []>} : vector<8x128xbf16>, vector<128x128xbf16>, vector<8x128xf32> -> vector<8x128xf32>
    %31 = vector.broadcast %7 : vector<1x128xf32> to vector<8x128xf32>
    %32 = arith.addf %30, %31 : vector<8x128xf32>
    %cst_13 = arith.constant 0.000000e+00 : f32
    %33 = vector.broadcast %cst_13 : f32 to vector<8x128xf32>
    %34 = arith.maximumf %32, %33 : vector<8x128xf32>
    %c1 = arith.constant 1 : index
    %c0_14 = arith.constant 0 : index
    %c0_15 = arith.constant 0 : index
    %35 = vector.load %arg2[%c1, %c0_14, %c0_15] : memref<3x3x128xf32, #tpu.memory_space<vmem>>, vector<1x3x128xf32>
    %36 = vector.shape_cast %35 : vector<1x3x128xf32> to vector<3x128xf32>
    %37 = vector.extract_strided_slice %36 {offsets = [0, 0], sizes = [1, 128], strides = [1, 1]} : vector<3x128xf32> to vector<1x128xf32>
    %38 = vector.extract_strided_slice %36 {offsets = [1, 0], sizes = [1, 128], strides = [1, 1]} : vector<3x128xf32> to vector<1x128xf32>
    %39 = vector.extract_strided_slice %36 {offsets = [2, 0], sizes = [1, 128], strides = [1, 1]} : vector<3x128xf32> to vector<1x128xf32>
    %cst_16 = arith.constant dense<0.000000e+00> : vector<128xf32>
    %40 = vector.multi_reduction <add>, %34, %cst_16 [0] : vector<8x128xf32> to vector<128xf32>
    %41 = vector.shape_cast %40 : vector<128xf32> to vector<1x128xf32>
    %cst_17 = arith.constant 1.250000e-01 : f32
    %42 = vector.broadcast %cst_17 : f32 to vector<1x128xf32>
    %43 = arith.mulf %41, %42 : vector<1x128xf32>
    %44 = vector.broadcast %43 : vector<1x128xf32> to vector<8x128xf32>
    %45 = arith.subf %34, %44 : vector<8x128xf32>
    %46 = arith.mulf %45, %45 : vector<8x128xf32>
    %cst_18 = arith.constant dense<0.000000e+00> : vector<128xf32>
    %47 = vector.multi_reduction <add>, %46, %cst_18 [0] : vector<8x128xf32> to vector<128xf32>
    %48 = vector.shape_cast %47 : vector<128xf32> to vector<1x128xf32>
    %cst_19 = arith.constant 1.250000e-01 : f32
    %49 = vector.broadcast %cst_19 : f32 to vector<1x128xf32>
    %50 = arith.mulf %48, %49 : vector<1x128xf32>
    %cst_20 = arith.constant 9.99999974E-6 : f32
    %51 = vector.broadcast %cst_20 : f32 to vector<1x128xf32>
    %52 = arith.addf %50, %51 : vector<1x128xf32>
    %53 = math.rsqrt %52 : vector<1x128xf32>
    %54 = arith.mulf %37, %53 : vector<1x128xf32>
    %55 = vector.broadcast %54 : vector<1x128xf32> to vector<8x128xf32>
    %56 = arith.mulf %45, %55 : vector<8x128xf32>
    %57 = vector.broadcast %38 : vector<1x128xf32> to vector<8x128xf32>
    %58 = arith.addf %56, %57 : vector<8x128xf32>
    %59 = arith.truncf %58 : vector<8x128xf32> to vector<8x128xbf16>
    %c1_21 = arith.constant 1 : index
    %c0_22 = arith.constant 0 : index
    %c0_23 = arith.constant 0 : index
    %60 = vector.load %arg1[%c1_21, %c0_22, %c0_23] : memref<3x128x128xbf16, #tpu.memory_space<vmem>>, vector<1x128x128xbf16>
    %61 = vector.shape_cast %60 : vector<1x128x128xbf16> to vector<128x128xbf16>
    %cst_24 = arith.constant dense<0.000000e+00> : vector<8x128xf32>
    %62 = tpu.matmul %59, %61, %cst_24 {dimension_numbers = #tpu.dot_dimension_numbers<[1], [0], [0], [1], [0, 0, 1, 1], [], []>} : vector<8x128xbf16>, vector<128x128xbf16>, vector<8x128xf32> -> vector<8x128xf32>
    %63 = vector.broadcast %39 : vector<1x128xf32> to vector<8x128xf32>
    %64 = arith.addf %62, %63 : vector<8x128xf32>
    %cst_25 = arith.constant 0.000000e+00 : f32
    %65 = vector.broadcast %cst_25 : f32 to vector<8x128xf32>
    %66 = arith.maximumf %64, %65 : vector<8x128xf32>
    %c2 = arith.constant 2 : index
    %c0_26 = arith.constant 0 : index
    %c0_27 = arith.constant 0 : index
    %67 = vector.load %arg2[%c2, %c0_26, %c0_27] : memref<3x3x128xf32, #tpu.memory_space<vmem>>, vector<1x3x128xf32>
    %68 = vector.shape_cast %67 : vector<1x3x128xf32> to vector<3x128xf32>
    %69 = vector.extract_strided_slice %68 {offsets = [0, 0], sizes = [1, 128], strides = [1, 1]} : vector<3x128xf32> to vector<1x128xf32>
    %70 = vector.extract_strided_slice %68 {offsets = [1, 0], sizes = [1, 128], strides = [1, 1]} : vector<3x128xf32> to vector<1x128xf32>
    %71 = vector.extract_strided_slice %68 {offsets = [2, 0], sizes = [1, 128], strides = [1, 1]} : vector<3x128xf32> to vector<1x128xf32>
    %cst_28 = arith.constant dense<0.000000e+00> : vector<128xf32>
    %72 = vector.multi_reduction <add>, %66, %cst_28 [0] : vector<8x128xf32> to vector<128xf32>
    %73 = vector.shape_cast %72 : vector<128xf32> to vector<1x128xf32>
    %cst_29 = arith.constant 1.250000e-01 : f32
    %74 = vector.broadcast %cst_29 : f32 to vector<1x128xf32>
    %75 = arith.mulf %73, %74 : vector<1x128xf32>
    %76 = vector.broadcast %75 : vector<1x128xf32> to vector<8x128xf32>
    %77 = arith.subf %66, %76 : vector<8x128xf32>
    %78 = arith.mulf %77, %77 : vector<8x128xf32>
    %cst_30 = arith.constant dense<0.000000e+00> : vector<128xf32>
    %79 = vector.multi_reduction <add>, %78, %cst_30 [0] : vector<8x128xf32> to vector<128xf32>
    %80 = vector.shape_cast %79 : vector<128xf32> to vector<1x128xf32>
    %cst_31 = arith.constant 1.250000e-01 : f32
    %81 = vector.broadcast %cst_31 : f32 to vector<1x128xf32>
    %82 = arith.mulf %80, %81 : vector<1x128xf32>
    %cst_32 = arith.constant 9.99999974E-6 : f32
    %83 = vector.broadcast %cst_32 : f32 to vector<1x128xf32>
    %84 = arith.addf %82, %83 : vector<1x128xf32>
    %85 = math.rsqrt %84 : vector<1x128xf32>
    %86 = arith.mulf %69, %85 : vector<1x128xf32>
    %87 = vector.broadcast %86 : vector<1x128xf32> to vector<8x128xf32>
    %88 = arith.mulf %77, %87 : vector<8x128xf32>
    %89 = vector.broadcast %70 : vector<1x128xf32> to vector<8x128xf32>
    %90 = arith.addf %88, %89 : vector<8x128xf32>
    %91 = arith.truncf %90 : vector<8x128xf32> to vector<8x128xbf16>
    %c2_33 = arith.constant 2 : index
    %c0_34 = arith.constant 0 : index
    %c0_35 = arith.constant 0 : index
    %92 = vector.load %arg1[%c2_33, %c0_34, %c0_35] : memref<3x128x128xbf16, #tpu.memory_space<vmem>>, vector<1x128x128xbf16>
    %93 = vector.shape_cast %92 : vector<1x128x128xbf16> to vector<128x128xbf16>
    %cst_36 = arith.constant dense<0.000000e+00> : vector<8x128xf32>
    %94 = tpu.matmul %91, %93, %cst_36 {dimension_numbers = #tpu.dot_dimension_numbers<[1], [0], [0], [1], [0, 0, 1, 1], [], []>} : vector<8x128xbf16>, vector<128x128xbf16>, vector<8x128xf32> -> vector<8x128xf32>
    %95 = vector.broadcast %71 : vector<1x128xf32> to vector<8x128xf32>
    %96 = arith.addf %94, %95 : vector<8x128xf32>
    %97 = math.tanh %96 : vector<8x128xf32>
    %c0_37 = arith.constant 0 : index
    %c0_38 = arith.constant 0 : index
    %98 = vector.load %arg3[%c0_37, %c0_38] : memref<8x128xf32, #tpu.memory_space<vmem>>, vector<8x128xf32>
    tpu.vector_store %arg3[%c0_37, %c0_38], %97 {strides = array<i32>} : memref<8x128xf32, #tpu.memory_space<vmem>>, vector<8x128xf32>,
    return
  }
}

</mosaic_0001>

<bundles_post_ra>
// kernel: _actor_forward.1
= control target key start
LH: loop header
LB: loop body
LE: loop exit
PB: predicated region body
PF: predicated region fallthrough
CT: control target
= control target key end

     0   :  { %8 = vsyncpa [#allocation3], 0  ;;  %s699_s0 = inlined_call_operand.hbm [shape: f32[8,32], index: 0, kind: input, shape index: {}]   ;;  %s700_s1 = inlined_call_operand.hbm [shape: bf16[3,128,128], index: 1, kind: input, shape index: {}]   ;;  %s701_s2 = inlined_call_operand.hbm [shape: f32[3,3,128], index: 2, kind: input, shape index: {}]   ;;  %s702_s3 = inlined_call_operand.hbm [shape: f32[8,128], index: 3, kind: output, shape index: {}]  }
   0x1   :  { %9 = vsyncpa [#allocation6], 0  ;;  %s26_s14 = sshll.u32 %s700_s1, 4  ;;  %s27_s14 = int_to_ptr.hbm [resolvable:$true] %s26_s14 }
   0x2   :  { %10 = vsyncpa [#allocation4], 0  ;;  %s661_s15 = smov [#allocation5]   ;;  %s16_s19 = sshll.u32 %s699_s0, 4  ;;  %s17_s19 = int_to_ptr.hbm [resolvable:$true] %s16_s19 }
   0x3   :  { %s28_s16 = sshll.u32 %s661_s15, 4  ;;  %s662_s20 = smov 64   ;;  %s29_s16 = int_to_ptr.vmem [resolvable:$true] %s28_s16 }
   0x4   :  { %s663_s21 = smov 4   ;;  %s664_s22 = smov [#allocation2]  }
   0x5   :  { %34 = dma.hbm_to_vmem [thread:$0]  %s27_s14, 3072, %s29_s16, [#allocation6], %s662_s20, %s662_s20, %s663_s21  }
   0x6   :  { %s18_s23 = sshll.u32 %s664_s22, 4  ;;  %s39_s26 = sshll.u32 %s701_s2, 4  ;;  %s19_s23 = int_to_ptr.vmem [resolvable:$true] %s18_s23  ;;  %s40_s26 = int_to_ptr.hbm [resolvable:$true] %s39_s26 }
   0x7   :  { %21 = dma.hbm_to_vmem [thread:$0]  %s17_s19, 128, %s19_s23, [#allocation3]  }
   0x8   :  { %s665_s1 = smov [#allocation7]  }
   0x9   :  { %s41_s27 = sshll.u32 %s665_s1, 4  ;;  %s42_s27 = int_to_ptr.vmem [resolvable:$true] %s41_s27 }
   0xa   :  { %47 = dma.hbm_to_vmem [thread:$0]  %s40_s26, 192, %s42_s27, [#allocation6], %s662_s20, %s662_s20, %s663_s21  }
   0xb   :  { %655 = dma.done.wait [#allocation3], 128  }
   0xc   :  { %656 = vsyncadd [#allocation3], 4294967168 }
   0xd   :  { %657 = dma.done.wait [#allocation6], 3264  }
   0xe   :  { %658 = vsyncadd [#allocation6], 4294964032  ;;  %v528_v0 = vld [vmem:[#allocation5 + $0x38] sm:$0xff]  ;;  %vm61_vm0 = vcmask 261120   ;;  %v527_v1 = vld [vmem:[#allocation5 + $0x30] sm:$0xff]  ;;  %s666_s0 = smov [#allocation8]  }
   0xf   :  { %162 = vmatpush.bf16.msra.mxu0 %v528_v0  ;;  %v60_v2 = vld [vmem:[#allocation2] sm:$0xff]  ;;  %v526_v5 = vld [vmem:[#allocation5 + $0x28] sm:$0xff]  ;;  %v525_v8 = vld [vmem:[#allocation5 + $0x20] sm:$0xff]  ;;  %s412_s2 = sshll.u32 %s666_s0, 4  ;;  %s414_s30 = sshll.u32 %s702_s3, 4  ;;  %s413_s2 = int_to_ptr.vmem [resolvable:$true] %s412_s2  ;;  %s415_s30 = int_to_ptr.hbm [resolvable:$true] %s414_s30 }
  0x10   :  { %v62_v3 = vsel %vm61_vm0, %v60_v2, 0.0  ;;  %v524_v11 = vld [vmem:[#allocation5 + $0x18] sm:$0xff]  ;;  %v523_v14 = vld [vmem:[#allocation5 + $0x10] sm:$0xff]  ;;  %v522_v17 = vld [vmem:[#allocation5 + $0x8] sm:$0xff] }
  0x11   :  { %v64_v4 = vrot.slane %v62_v3, 4  ;;  %v521_v20 = vld [vmem:[#allocation5] sm:$0xff]  ;;  %v536_v44 = vld [vmem:[#allocation5 + $0x78] sm:$0xff]  ;;  %v535_v47 = vld [vmem:[#allocation5 + $0x70] sm:$0xff] }
  0x12   :  { %v63_v32 = vld [vmem:[#allocation7] sm:$0x7]  ;;  %277 = vmatpush.bf16.msra.mxu1 %v536_v44  ;;  %v534_v50 = vld [vmem:[#allocation5 + $0x68] sm:$0xff]  ;;  %v532_v56 = vld [vmem:[#allocation5 + $0x58] sm:$0xff] }
  0x13   :  { %163 = vmatpush.bf16.msra.mxu0 %v527_v1  ;;  %v65_v6 = vadd.f32 %v64_v4, %v62_v3  ;;  %v94_v37 = vperm.slane %v63_v32, 1  ;;  %v113_v41 = vperm.slane %v63_v32, 2  ;;  %v533_v53 = vld [vmem:[#allocation5 + $0x60] sm:$0xff]  ;;  %v531_v59 = vld [vmem:[#allocation5 + $0x50] sm:$0xff]  ;;  %v530_v62 = vld [vmem:[#allocation5 + $0x48] sm:$0xff] }
  0x14   :  { %v529_v1 = vld [vmem:[#allocation5 + $0x40] sm:$0xff] }
  0x15   :  { %v66_v7 = vrot.slane %v65_v6, 2 }
  0x16   :  { %278 = vmatpush.bf16.msra.mxu1 %v535_v47 }
  0x17   :  { %164 = vmatpush.bf16.msra.mxu0 %v526_v5  ;;  %v67_v9 = vadd.f32 %v66_v7, %v65_v6 }
  0x19   :  { %v68_v10 = vrot.slane %v67_v9, 1 }
  0x1a   :  { %279 = vmatpush.bf16.msra.mxu1 %v534_v50 }
  0x1b   :  { %165 = vmatpush.bf16.msra.mxu0 %v525_v8  ;;  %v69_v12 = vadd.f32 %v68_v10, %v67_v9 }
  0x1d   :  { %v70_v13 = vmul.f32 0.125, %v69_v12  ;;  %v177_v12 = vld [vmem:[#allocation7 + $0x4] sm:$0x7] }
  0x1e   :  { %280 = vmatpush.bf16.msra.mxu1 %v533_v53 }
  0x1f   :  { %166 = vmatpush.bf16.msra.mxu0 %v524_v11  ;;  %v71_v15 = vsub.f32 %v62_v3, %v70_v13 }
  0x21   :  { %v72_v16 = vmul.f32 %v71_v15, %v71_v15 }
  0x22   :  { %281 = vmatpush.bf16.msra.mxu1 %v532_v56  ;;  %v292_v56 = vld [vmem:[#allocation7 + $0x8] sm:$0x7] }
  0x23   :  { %167 = vmatpush.bf16.msra.mxu0 %v523_v14  ;;  %v73_v18 = vrot.slane %v72_v16, 4 }
  0x25   :  { %v74_v19 = vadd.f32 %v73_v18, %v72_v16 }
  0x26   :  { %282 = vmatpush.bf16.msra.mxu1 %v531_v59 }
  0x27   :  { %168 = vmatpush.bf16.msra.mxu0 %v522_v17  ;;  %v75_v21 = vrot.slane %v74_v19, 2  ;;  %v208_v17 = vperm.slane %v177_v12, 1 }
  0x29   :  { %v76_v22 = vadd.f32 %v75_v21, %v74_v19  ;;  %v228_v21 = vperm.slane %v177_v12, 2 }
  0x2a   :  { %283 = vmatpush.bf16.msra.mxu1 %v530_v62 }
  0x2b   :  { %169 = vmatpush.bf16.msra.mxu0 %v521_v20  ;;  %v77_v23 = vrot.slane %v76_v22, 1 }
  0x2d   :  { %v78_v24 = vadd.f32 %v77_v23, %v76_v22 }
  0x2e   :  { %284 = vmatpush.bf16.msra.mxu1 %v529_v1  ;;  %v343_v1 = vperm.slane %v292_v56, 2 }
  0x2f   :  { %v79_v25 = vmul.f32 0.125, %v78_v24  ;;  %v544_v24 = vld [vmem:[#allocation5 + $0xb8] sm:$0xff] }
  0x30   :  { %392 = vmatpush.bf16.msra.mxu2 %v544_v24 }
  0x31   :  { %v80_v26 = vadd.f32 1e-05, %v79_v25 }
  0x33   :  { %551 = vrsqrt.f32 %v80_v26  ;;  %vm87_vm1 = vweird.f32 %v80_v26 }
  0x39   :  { %v552_v27 = vpop.eup %551 }
  0x3a   :  { %v82_v28 = vmul.f32 %v552_v27, %v80_v26  ;;  %vm88_vm2 = vweird.f32 %v552_v27 }
  0x3b   :  { %vm89_vm3 = vmor %vm87_vm1, %vm88_vm2 }
  0x3c   :  { %v83_v29 = vmul.f32 %v552_v27, %v82_v28 }
  0x3e   :  { %v84_v30 = vmul.f32 0.5, %v83_v29 }
  0x40   :  { %v85_v31 = vsub.f32 1.5, %v84_v30  ;;  %v542_v30 = vld [vmem:[#allocation5 + $0xa8] sm:$0xff] }
  0x42   :  { %v86_v33 = vmul.f32 %v552_v27, %v85_v31 }
  0x44   :  { %v90_v34 = vsel %vm89_vm3, %v552_v27, %v86_v33  ;;  %v543_v27 = vld [vmem:[#allocation5 + $0xb0] sm:$0xff]  ;;  %v541_v33 = vld [vmem:[#allocation5 + $0xa0] sm:$0xff] }
  0x45   :  { %v91_v35 = vmul.f32 %v90_v34, %v63_v32  ;;  %393 = vmatpush.bf16.msra.mxu2 %v543_v27 }
  0x47   :  { %v92_v36 = vperm.slane %v91_v35, 0 }
  0x49   :  { %v93_v38 = vmul.f32 %v92_v36, %v71_v15  ;;  %394 = vmatpush.bf16.msra.mxu2 %v542_v30  ;;  %v540_v36 = vld [vmem:[#allocation5 + $0x98] sm:$0xff] }
  0x4b   :  { %v95_v39 = vadd.f32 %v94_v37, %v93_v38 }
  0x4d   :  { %v96_v40 = vpack.c.bf16 %v95_v39, %v95_v39  ;;  %395 = vmatpush.bf16.msra.mxu2 %v541_v33  ;;  %v539_v39 = vld [vmem:[#allocation5 + $0x90] sm:$0xff] }
  0x4f   :  { %170 = vmatmul.bf16.vlgmr.msra.gmra.mxu0 %v96_v40 }
  0x51   :  { %396 = vmatpush.bf16.msra.mxu2 %v540_v36 }
  0x55   :  { %397 = vmatpush.bf16.msra.mxu2 %v539_v39 }
  0xcc   :  { %v171_v42 = vpop.f32.mrf.mxu0 }
  0xcd   :  { %v172_v43 = vadd.f32 %v171_v42, %v113_v41  ;;  %v538_v42 = vld [vmem:[#allocation5 + $0x88] sm:$0xff] }
  0xce   :  { %398 = vmatpush.bf16.msra.mxu2 %v538_v42 }
  0xcf   :  { %v175_v45 = vmax.f32 %v172_v43, 0.0 }
  0xd1   :  { %v178_v46 = vrot.slane %v175_v45, 4 }
  0xd3   :  { %v179_v48 = vadd.f32 %v178_v46, %v175_v45 }
  0xd4   :  { %v173_v49 = vpop.f32.mrf.mxu0 }
  0xd5   :  { %v180_v51 = vrot.slane %v179_v48, 2 }
  0xd7   :  { %v181_v52 = vadd.f32 %v180_v51, %v179_v48 }
  0xd9   :  { %v182_v54 = vrot.slane %v181_v52, 1 }
  0xdb   :  { %v183_v55 = vadd.f32 %v182_v54, %v181_v52 }
  0xdd   :  { %v184_v57 = vmul.f32 0.125, %v183_v55 }
  0xdf   :  { %v185_v58 = vsub.f32 %v175_v45, %v184_v57  ;;  %v537_v45 = vld [vmem:[#allocation5 + $0x80] sm:$0xff] }
  0xe0   :  { %399 = vmatpush.bf16.msra.mxu2 %v537_v45 }
  0xe1   :  { %v186_v60 = vmul.f32 %v185_v58, %v185_v58 }
  0xe3   :  { %v187_v61 = vrot.slane %v186_v60, 4 }
  0xe5   :  { %v188_v63 = vadd.f32 %v187_v61, %v186_v60  ;;  %v323_v61 = vperm.slane %v292_v56, 1 }
  0xe7   :  { %v189_v0 = vrot.slane %v188_v63, 2 }
  0xe9   :  { %v190_v2 = vadd.f32 %v189_v0, %v188_v63 }
  0xeb   :  { %v191_v3 = vrot.slane %v190_v2, 1 }
  0xed   :  { %v192_v4 = vadd.f32 %v191_v3, %v190_v2 }
  0xef   :  { %v193_v5 = vmul.f32 0.125, %v192_v4 }
  0xf1   :  { %v194_v6 = vadd.f32 1e-05, %v193_v5 }
  0xf3   :  { %553 = vrsqrt.f32 %v194_v6  ;;  %vm201_vm5 = vweird.f32 %v194_v6 }
  0xf9   :  { %v554_v7 = vpop.eup %553 }
  0xfa   :  { %v196_v8 = vmul.f32 %v554_v7, %v194_v6  ;;  %vm202_vm4 = vweird.f32 %v554_v7 }
  0xfb   :  { %vm203_vm6 = vmor %vm201_vm5, %vm202_vm4 }
  0xfc   :  { %v197_v9 = vmul.f32 %v554_v7, %v196_v8 }
  0xfe   :  { %v198_v10 = vmul.f32 0.5, %v197_v9 }
 0x100   :  { %v199_v11 = vsub.f32 1.5, %v198_v10 }
 0x102   :  { %v200_v13 = vmul.f32 %v554_v7, %v199_v11 }
 0x104   :  { %v204_v14 = vsel %vm203_vm6, %v554_v7, %v200_v13 }
 0x105   :  { %v205_v15 = vmul.f32 %v204_v14, %v177_v12 }
 0x107   :  { %v206_v16 = vperm.slane %v205_v15, 0 }
 0x109   :  { %v207_v18 = vmul.f32 %v206_v16, %v185_v58 }
 0x10b   :  { %v209_v19 = vadd.f32 %v208_v17, %v207_v18 }
 0x10d   :  { %v210_v20 = vpack.c.bf16 %v209_v19, %v209_v19 }
 0x10f   :  { %285 = vmatmul.bf16.vlgmr.msra.gmra.mxu1 %v210_v20 }
 0x18c   :  { %v286_v22 = vpop.f32.mrf.mxu1 }
 0x18d   :  { %v287_v23 = vadd.f32 %v286_v22, %v228_v21 }
 0x18f   :  { %v290_v25 = vmax.f32 %v287_v23, 0.0 }
 0x191   :  { %v293_v26 = vrot.slane %v290_v25, 4 }
 0x193   :  { %v294_v28 = vadd.f32 %v293_v26, %v290_v25 }
 0x194   :  { %v288_v29 = vpop.f32.mrf.mxu1 }
 0x195   :  { %v295_v31 = vrot.slane %v294_v28, 2 }
 0x197   :  { %v296_v32 = vadd.f32 %v295_v31, %v294_v28 }
 0x199   :  { %v297_v34 = vrot.slane %v296_v32, 1 }
 0x19b   :  { %v298_v35 = vadd.f32 %v297_v34, %v296_v32 }
 0x19d   :  { %v299_v37 = vmul.f32 0.125, %v298_v35 }
 0x19f   :  { %v300_v38 = vsub.f32 %v290_v25, %v299_v37 }
 0x1a1   :  { %v301_v40 = vmul.f32 %v300_v38, %v300_v38 }
 0x1a3   :  { %v302_v41 = vrot.slane %v301_v40, 4 }
 0x1a5   :  { %v303_v43 = vadd.f32 %v302_v41, %v301_v40 }
 0x1a7   :  { %v304_v44 = vrot.slane %v303_v43, 2 }
 0x1a9   :  { %v305_v46 = vadd.f32 %v304_v44, %v303_v43 }
 0x1ab   :  { %v306_v47 = vrot.slane %v305_v46, 1 }
 0x1ad   :  { %v307_v48 = vadd.f32 %v306_v47, %v305_v46 }
 0x1af   :  { %v308_v49 = vmul.f32 0.125, %v307_v48 }
 0x1b1   :  { %v309_v50 = vadd.f32 1e-05, %v308_v49 }
 0x1b3   :  { %555 = vrsqrt.f32 %v309_v50  ;;  %vm316_vm8 = vweird.f32 %v309_v50 }
 0x1b9   :  { %v556_v51 = vpop.eup %555 }
 0x1ba   :  { %v311_v52 = vmul.f32 %v556_v51, %v309_v50  ;;  %vm317_vm7 = vweird.f32 %v556_v51 }
 0x1bb   :  { %vm318_vm9 = vmor %vm316_vm8, %vm317_vm7 }
 0x1bc   :  { %v312_v53 = vmul.f32 %v556_v51, %v311_v52 }
 0x1be   :  { %v313_v54 = vmul.f32 0.5, %v312_v53 }
 0x1c0   :  { %v314_v55 = vsub.f32 1.5, %v313_v54 }
 0x1c2   :  { %v315_v57 = vmul.f32 %v556_v51, %v314_v55 }
 0x1c4   :  { %v319_v58 = vsel %vm318_vm9, %v556_v51, %v315_v57 }
 0x1c5   :  { %v320_v59 = vmul.f32 %v319_v58, %v292_v56 }
 0x1c7   :  { %v321_v60 = vperm.slane %v320_v59, 0 }
 0x1c9   :  { %v322_v62 = vmul.f32 %v321_v60, %v300_v38 }
 0x1cb   :  { %v324_v63 = vadd.f32 %v323_v61, %v322_v62 }
 0x1cd   :  { %v325_v0 = vpack.c.bf16 %v324_v63, %v324_v63 }
 0x1cf   :  { %400 = vmatmul.bf16.vlgmr.msra.gmra.mxu2 %v325_v0 }
 0x252   :  { %v401_v2 = vpop.f32.mrf.mxu2 }
 0x253   :  { %v402_v3 = vadd.f32 %v401_v2, %v343_v1 }
 0x255   :  { %557 = vtanh.f32 %v402_v3 }
 0x25a   :  { %v403_v4 = vpop.f32.mrf.mxu2 }
 0x25b   :  { %v558_v5 = vpop.eup %557 }
 0x25c   :  { %406 = vst [vmem:[#allocation8] sm:$0xff] %v558_v5 }
 0x25d   :  { %417 = dma.vmem_to_hbm [thread:$0]  %s413_s2, 128, %s415_s30, [#allocation4]  }
 0x25e   :  { %659 = dma.done.wait [#allocation4], 128  }
 0x25f   :  { %660 = vsyncadd [#allocation4], 4294967168 }
 0x260   :  { %422 = vsyncpa [#allocation3], 1 }
 0x261   :  { %423 = vsyncpa [#allocation6], 1 }
 0x262   :  { %424 = vsyncpa [#allocation4], 1 }

</bundles_post_ra>
